<compile_context>
chip_gen: v7x
topology: tpu7x:2x2x1
jax: 0.10.0
libtpu: 0.0.40
codegen_flags: <defaults>
</compile_context>

<pallas_src>
import functools

import jax
import jax.numpy as jnp
from jax import lax
from jax.experimental import pallas as pl
from jax.experimental.pallas import tpu as pltpu


def _conv_row_kernel(x_ref, w_ref, b_ref, o_ref, *, span_g, group_stride, tg,
                     n_row_tiles):
    """One (batch, row-tile) grid step.

    x_ref: (1, Hp, P)            H-padded image, P = W*C flattened on lanes
    w_ref: (span_g*P, g*OW*OC)   expanded weights (KH/KW taps, column stride,
                                 W zero-padding, output row-grouping folded in)
    b_ref: (1, g*OW*OC)          bias tiled over the packed output columns
    o_ref: (1, tg, g*OW*OC)      lane-dense output tile (g output rows / row)
    """
    p_dim = x_ref.shape[-1]
    span = (tg - 1) * group_stride + span_g      # input rows this tile touches

    if n_row_tiles == 1:
        slab = x_ref[0, :span, :]                # static slice, single tile
    else:
        # tg*group_stride is a multiple of 8 here -> sublane-aligned start.
        step = tg * group_stride
        row0 = pl.multiple_of(pl.program_id(1) * step, step)
        slab = x_ref[0, pl.ds(row0, span), :]

    # im2row: lane-concat of span_g row-shifted (and row-strided) slabs.
    if group_stride == 1:
        pieces = [slab[v:v + tg, :] for v in range(span_g)]
    else:
        # TODO(synk): stride>1 still uses strided sublane slices; deinterleave
        # rows by stride phase in the wrapper to make these reads contiguous.
        last = (tg - 1) * group_stride + 1
        pieces = [lax.slice(slab, (v, 0), (v + last, p_dim), (group_stride, 1))
                  for v in range(span_g)]
    lhs = jnp.concatenate(pieces, axis=-1) if span_g > 1 else pieces[0]

    # Single deep MXU matmul per tile; bias added once at the end.
    acc = jnp.dot(lhs, w_ref[...], preferred_element_type=jnp.float32)
    o_ref[0] = (acc + b_ref[...]).astype(o_ref.dtype)


def _pick_row_tile(oh_g, bytes_per_row, min_tiles=1):
    """Largest multiple-of-8 divisor of oh_g whose f32 accumulator stays
    <= 64 KiB (~16 vregs), preferring at least `min_tiles` grid steps."""
    acc_cap = 64 * 1024
    if oh_g % 8 != 0:
        return oh_g                               # must use the full extent
    cands = [t for t in range(8, oh_g + 1, 8) if oh_g % t == 0]
    for need in (min_tiles, 1):
        fits = [t for t in cands
                if t * bytes_per_row <= acc_cap and oh_g // t >= need]
        if fits:
            return max(fits)
    return cands[0]


def _vmem_limit_bytes():
    """Per-generation VMEM budget (v7x: 64 MiB/TC vs 128 MiB on v5e/v6e)."""
    cap = None
    try:
        cap = getattr(pltpu.get_tpu_info(), "vmem_capacity_bytes", None)
    except Exception:
        cap = None
    if not cap:
        return 48 * 1024 * 1024
    if cap <= 64 * 1024 * 1024:
        return 40 * 1024 * 1024
    return 64 * 1024 * 1024


def _expand_weight(weight, bias, *, k, s, iw, ow, oc, c, pad_left, g, span_g):
    """(OC,C,K,K), (OC,) -> ((span_g*W*C), (g*OW*OC)) weight and (1, g*OW*OC)
    bias.  Folds the KH/KW taps, the column stride, the W zero-padding and the
    output row-grouping into a single matmul RHS.

    W_big[v*W*C + u*C + ci, a*OW*OC + j*OC + co] = weight[co, ci, kh, kw]
      with kh = v - a*s, kw = u + pad_left - j*s (zero outside [0, K)).
    """
    w_hwio = jnp.transpose(weight, (2, 3, 1, 0))          # (K, K, C, OC)
    v = jnp.arange(span_g)
    a = jnp.arange(g)
    u = jnp.arange(iw)
    j = jnp.arange(ow)
    kh = v[:, None] - a[None, :] * s                      # (span_g, g)
    kw = u[:, None] + pad_left - j[None, :] * s           # (W, OW)
    valid = ((kh[:, :, None, None] >= 0) & (kh[:, :, None, None] < k)
             & (kw[None, None, :, :] >= 0) & (kw[None, None, :, :] < k))
    kh_safe = jnp.clip(kh, 0, k - 1)
    kw_safe = jnp.clip(kw, 0, k - 1)
    w_big = w_hwio[kh_safe[:, :, None, None], kw_safe[None, None, :, :]]
    # (span_g, g, W, OW, C, OC); zero the out-of-tap entries.
    w_big = jnp.where(valid[..., None, None], w_big, 0.0)
    # contraction-major (v, u, ci); output-major (a, j, co).
    w_big = jnp.transpose(w_big, (0, 2, 4, 1, 3, 5))
    w_big = w_big.reshape(span_g * iw * c, g * ow * oc)
    b_tiled = jnp.tile(bias.astype(jnp.float32), g * ow).reshape(1, g * ow * oc)
    return w_big, b_tiled


def conv2d_auto_padding(x_nchw, weight, bias, *, kernel_size, stride=1,
                        output_size=None, row_tile=None, compute_dtype=None):
    """Forward of Conv2dAutoPadding.

    x_nchw: (N, C, H, W); weight: (OC, C, K, K); bias: (OC,).
    compute_dtype: optionally jnp.bfloat16 for the MXU inputs — recommended on
    all generations incl. v5e (MXU is natively bf16; accumulation stays f32).
    row_tile: output rows per grid step (auto-picked if None/invalid).
    """
    n, c, ih, iw = x_nchw.shape
    oc = weight.shape[0]
    k = kernel_size
    s = stride

    # --- auto padding, identical to the PyTorch module's forward -------------
    if output_size is not None:
        if output_size == 'half':
            out_h, out_w = ih // 2, iw // 2
        else:
            out_h, out_w = output_size
        pad_h = max((out_h - 1) * s + k - ih, 0)
        pad_w = max((out_w - 1) * s + k - iw, 0)
    else:
        pad_h = max((ih - 1) * s + k - ih, 0)
        pad_w = max((iw - 1) * s + k - iw, 0)
    pad_top = pad_h // 2
    pad_bottom = pad_h - pad_top
    pad_left = pad_w // 2

    hp = ih + pad_h
    oh = (hp - k) // s + 1
    ow = (iw + pad_w - k) // s + 1
    p_dim = iw * c
    nout = ow * oc

    # --- output row-grouping: keep the output lane width a multiple of 128 ---
    if nout >= 128 or 128 % nout != 0:
        g = 1
    else:
        g = 128 // nout
        while g > 1 and oh % g != 0:
            g //= 2
    oh_g = oh // g
    gnout = g * nout
    span_g = (g - 1) * s + k       # input rows one output-row group touches
    gstride = g * s                # input-row step between consecutive groups

    # --- glue: NCHW -> (N, Hp, W*C); only H padding is materialized ----------
    # TODO(synk): cache w_big/b_tiled per layer and keep the flattened
    # (N, OH_g, g*OW*OC) layout between layers; this transpose/pad/gather glue
    # dominates wall clock at these small sizes.
    x_nhwc = jnp.transpose(x_nchw, (0, 2, 3, 1))
    x_nhwc = jnp.pad(x_nhwc, ((0, 0), (pad_top, pad_bottom), (0, 0), (0, 0)))
    x_flat = x_nhwc.reshape(n, hp, p_dim)

    w_big, b_tiled = _expand_weight(weight, bias, k=k, s=s, iw=iw, ow=ow,
                                    oc=oc, c=c, pad_left=pad_left, g=g,
                                    span_g=span_g)
    # TODO(synk): for large W the zero-inflated weight does ~W/K extra MXU work
    # and grows O(W^2); add an OW-tile grid axis over block-diagonal weight
    # slices to restore minimal FLOPs/VMEM (matters most on v7x's 64 MiB).

    if compute_dtype is not None:
        x_flat = x_flat.astype(compute_dtype)
        w_big = w_big.astype(compute_dtype)

    # --- spatial row tiling (grouped rows) ------------------------------------
    min_tiles = 2 if n < 2 else 1      # keep both v7x TensorCores busy at N=1
    tg = None
    if row_tile is not None and row_tile % g == 0:
        cand = row_tile // g
        if cand >= 1 and oh_g % cand == 0 and (cand % 8 == 0 or cand == oh_g):
            tg = cand
    if tg is None:
        tg = _pick_row_tile(oh_g, gnout * 4, min_tiles=min_tiles)
    n_row_tiles = oh_g // tg

    kernel = functools.partial(_conv_row_kernel, span_g=span_g,
                               group_stride=gstride, tg=tg,
                               n_row_tiles=n_row_tiles)

    # TODO(synk): the whole H-padded image stays VMEM-resident per batch
    # element; switch to a halo row-tiled input spec (or manual
    # make_async_copy) when 2*hp*W*C*itemsize approaches the VMEM budget.
    out_flat = pl.pallas_call(
        kernel,
        out_shape=jax.ShapeDtypeStruct((n, oh_g, gnout), x_nchw.dtype),
        grid_spec=pltpu.PrefetchScalarGridSpec(
            num_scalar_prefetch=0,
            grid=(n, n_row_tiles),
            in_specs=[
                # Whole H-padded image; block index constant in r -> DMA'd once
                # per batch element and kept resident in VMEM.
                pl.BlockSpec((1, hp, p_dim), lambda b, r: (b, 0, 0)),
                pl.BlockSpec((span_g * p_dim, gnout), lambda b, r: (0, 0)),
                pl.BlockSpec((1, gnout), lambda b, r: (0, 0)),
            ],
            out_specs=pl.BlockSpec((1, tg, gnout), lambda b, r: (b, r, 0)),
        ),
        compiler_params=pltpu.CompilerParams(
            dimension_semantics=("parallel", "parallel"),
            vmem_limit_bytes=_vmem_limit_bytes(),
        ),
    )(x_flat, w_big, b_tiled)

    # (n, oh_g, g*ow*oc) -> (n, oh, ow, oc): (q, a) merge row-major into oh.
    out = out_flat.reshape(n, oh, ow, oc)
    return jnp.transpose(out, (0, 3, 1, 2))                 # back to NCHW


def _torch_like_reference(x, weight, bias, k, s, output_size):
    """Pure-JAX replica of the PyTorch module's forward (pad -> VALID conv)."""
    _, _, ih, iw = x.shape
    if output_size is not None:
        if output_size == 'half':
            out_h, out_w = ih // 2, iw // 2
        else:
            out_h, out_w = output_size
        pad_h = max((out_h - 1) * s + k - ih, 0)
        pad_w = max((out_w - 1) * s + k - iw, 0)
    else:
        pad_h = max((ih - 1) * s + k - ih, 0)
        pad_w = max((iw - 1) * s + k - iw, 0)
    pt, pb = pad_h // 2, pad_h - pad_h // 2
    pleft, pright = pad_w // 2, pad_w - pad_w // 2
    xp = jnp.pad(x, ((0, 0), (0, 0), (pt, pb), (pleft, pright)))
    y = lax.conv_general_dilated(
        xp, weight, (s, s), 'VALID',
        dimension_numbers=('NCHW', 'OIHW', 'NCHW'))
    return y + bias[None, :, None, None]


if __name__ == "__main__":
    key = jax.random.PRNGKey(0)
    k_w, k_b, k_x, k_x2 = jax.random.split(key, 4)

    in_channels, out_channels, kernel_size = 4, 8, 3

    # nn.Conv2d-style default init: U(-1/sqrt(fan_in), 1/sqrt(fan_in)).
    fan_in = in_channels * kernel_size * kernel_size
    bound = 1.0 / (fan_in ** 0.5)
    weight = jax.random.uniform(
        k_w, (out_channels, in_channels, kernel_size, kernel_size),
        jnp.float32, -bound, bound)
    bias = jax.random.uniform(k_b, (out_channels,), jnp.float32, -bound, bound)
    x = jax.random.normal(k_x, (2, in_channels, 16, 16), jnp.float32)
    x2 = jax.random.normal(k_x2, (2, in_channels, 32, 32), jnp.float32)

    cases = [
        # (input, kwargs, atol, rtol)
        (x, dict(stride=1, output_size=None), 5e-4, 5e-4),           # same-size
        (x, dict(stride=1, output_size=None, row_tile=8,             # 2 tiles,
                 compute_dtype=jnp.bfloat16), 3e-2, 3e-2),           # bf16 MXU
        (x, dict(stride=2, output_size='half'), 5e-4, 5e-4),         # g=2 pack
        (x2, dict(stride=2, output_size='half', row_tile=8),         # strided +
         5e-4, 5e-4),                                                # multi-tile
    ]

    for xi, kwargs, atol, rtol in cases:
        out = conv2d_auto_padding(xi, weight, bias, kernel_size=kernel_size,
                                  **kwargs)
        out = jax.block_until_ready(out)
        ref = _torch_like_reference(xi, weight, bias, kernel_size,
                                    kwargs.get('stride', 1),
                                    kwargs.get('output_size', None))
        assert out.shape == ref.shape, (kwargs, out.shape, ref.shape)
        err = float(jnp.max(jnp.abs(out - ref)))
        assert jnp.allclose(out, ref, atol=atol, rtol=rtol), (kwargs, err)

    print("KERNEL_OK")
</pallas_src>

<mosaic_0001>
module attributes {stable_mosaic.version = 11 : i64} {
  func.func @_conv_row_kernel(%arg0: i32, %arg1: i32, %arg2: memref<1x18x64xf32, #tpu.memory_space<vmem>>, %arg3: memref<192x128xf32, #tpu.memory_space<vmem>>, %arg4: memref<1x128xf32, #tpu.memory_space<vmem>>, %arg5: memref<1x16x128xf32, #tpu.memory_space<vmem>>) attributes {dimension_semantics = [#tpu.dimension_semantics<parallel>, #tpu.dimension_semantics<parallel>], iteration_bounds = array<i64: 2, 1>, scalar_prefetch = 0 : i64, scratch_operands = 0 : i64, tpu.core_type = #tpu.core_type<tc>, window_params = [{transform_indices = @transform_0, window_bounds = array<i64: 1, 18, 64>}, {pipeline_mode = #tpu.pipeline_mode<synchronous>, transform_indices = @transform_1, window_bounds = array<i64: 192, 128>}, {pipeline_mode = #tpu.pipeline_mode<synchronous>, transform_indices = @transform_2, window_bounds = array<i64: 1, 128>}, {transform_indices = @transform_3, window_bounds = array<i64: 1, 16, 128>}]} {
    %c0 = arith.constant 0 : index
    %c0_0 = arith.constant 0 : index
    %c0_1 = arith.constant 0 : index
    %0 = vector.load %arg2[%c0, %c0_0, %c0_1] : memref<1x18x64xf32, #tpu.memory_space<vmem>>, vector<1x18x64xf32>
    %1 = vector.shape_cast %0 : vector<1x18x64xf32> to vector<18x64xf32>
    %2 = vector.extract_strided_slice %1 {offsets = [0, 0], sizes = [16, 64], strides = [1, 1]} : vector<18x64xf32> to vector<16x64xf32>
    %3 = vector.extract_strided_slice %1 {offsets = [1, 0], sizes = [16, 64], strides = [1, 1]} : vector<18x64xf32> to vector<16x64xf32>
    %4 = vector.extract_strided_slice %1 {offsets = [2, 0], sizes = [16, 64], strides = [1, 1]} : vector<18x64xf32> to vector<16x64xf32>
    %5 = tpu.concatenate %2, %3, %4 in 1 : vector<16x64xf32>, vector<16x64xf32>, vector<16x64xf32> -> vector<16x192xf32>
    %c0_2 = arith.constant 0 : index
    %c0_3 = arith.constant 0 : index
    %6 = vector.load %arg3[%c0_2, %c0_3] : memref<192x128xf32, #tpu.memory_space<vmem>>, vector<192x128xf32>
    %cst = arith.constant dense<0.000000e+00> : vector<16x128xf32>
    %7 = tpu.matmul %5, %6, %cst {dimension_numbers = #tpu.dot_dimension_numbers<[1], [0], [0], [1], [0, 0, 1, 1], [], []>} : vector<16x192xf32>, vector<192x128xf32>, vector<16x128xf32> -> vector<16x128xf32>
    %c0_4 = arith.constant 0 : index
    %c0_5 = arith.constant 0 : index
    %8 = vector.load %arg4[%c0_4, %c0_5] : memref<1x128xf32, #tpu.memory_space<vmem>>, vector<1x128xf32>
    %9 = vector.broadcast %8 : vector<1x128xf32> to vector<16x128xf32>
    %10 = arith.addf %7, %9 : vector<16x128xf32>
    %c0_6 = arith.constant 0 : index
    %c0_7 = arith.constant 0 : index
    %c0_8 = arith.constant 0 : index
    %11 = vector.load %arg5[%c0_6, %c0_7, %c0_8] : memref<1x16x128xf32, #tpu.memory_space<vmem>>, vector<1x16x128xf32>
    %12 = vector.shape_cast %11 : vector<1x16x128xf32> to vector<16x128xf32>
    %13 = vector.shape_cast %10 : vector<16x128xf32> to vector<1x16x128xf32>
    tpu.vector_store %arg5[%c0_6, %c0_7, %c0_8], %13 {strides = array<i32>} : memref<1x16x128xf32, #tpu.memory_space<vmem>>, vector<1x16x128xf32>,
    return
  }
  func.func @transform_0(%arg0: i32, %arg1: i32) -> (i32, i32, i32) {
    %c0_i32 = arith.constant 0 : i32
    %c0_i32_0 = arith.constant 0 : i32
    %c0_i32_1 = arith.constant 0 : i32
    return %arg0, %c0_i32, %c0_i32_0 : i32, i32, i32
  }
  func.func @transform_1(%arg0: i32, %arg1: i32) -> (i32, i32) {
    %c0_i32 = arith.constant 0 : i32
    %c0_i32_0 = arith.constant 0 : i32
    %c0_i32_1 = arith.constant 0 : i32
    return %c0_i32, %c0_i32_0 : i32, i32
  }
  func.func @transform_2(%arg0: i32, %arg1: i32) -> (i32, i32) {
    %c0_i32 = arith.constant 0 : i32
    %c0_i32_0 = arith.constant 0 : i32
    %c0_i32_1 = arith.constant 0 : i32
    return %c0_i32, %c0_i32_0 : i32, i32
  }
  func.func @transform_3(%arg0: i32, %arg1: i32) -> (i32, i32, i32) {
    %c0_i32 = arith.constant 0 : i32
    %c0_i32_0 = arith.constant 0 : i32
    return %arg0, %arg1, %c0_i32 : i32, i32, i32
  }
}

</mosaic_0001>

<bundles_post_ra>
// kernel: tpu_custom_call.1
= control target key start
LH: loop header
LB: loop body
LE: loop exit
PB: predicated region body
PF: predicated region fallthrough
CT: control target
= control target key end

     0   :  { %8 = vsyncpa [#allocation3], 0  ;;  %s931_s0 = inlined_call_operand.vmem [shape: f32[2,18,64], index: 0, kind: input, shape index: {}]   ;;  %s932_s1 = inlined_call_operand.hbm [shape: f32[192,128], index: 1, kind: input, shape index: {}]   ;;  %s933_s2 = inlined_call_operand.vmem [shape: f32[1,128], index: 2, kind: input, shape index: {}]   ;;  %s934_s3 = inlined_call_operand.hbm [shape: f32[2,16,128], index: 3, kind: output, shape index: {}]  }
   0x1   :  { %9 = vsyncpa [#allocation4], 0 }
   0x2   :  { %11 = vsyncpa [#allocation4 + $0x1], 0  ;;  %s735_s12 = smov 0   ;;  %s737_s13 = smov 0  }
   0x3   :  { %s739_s14 = smov 0   ;;  %s741_s15 = smov 0  }
   0x4   :  { %s743_s16 = smov 0   ;;  %s745_s17 = smov 0  }
   0x5 LB: > { %s439_s18 = sadd.s32 4294967295, %s705_s17   ;;  %s440_s19 = sadd.s32 4294967294, %s705_s17   ;;  %s705_s17 = sphi %s745_s17, %s17_s17   ;;  %s701_s16 = sphi %s743_s16, %s952_s16   ;;  %s697_s15 = sphi %s741_s15, %s951_s15   ;;  %s693_s14 = sphi %s739_s14, %s950_s14   ;;  %s689_s13 = sphi %s737_s13, %s949_s13   ;;  %s685_s12 = sphi %s735_s12, %s948_s12  }
   0x6   : > { %s29_s20 = sadd.s32 1, %s701_s16  ;;  %s106_s21 = sadd.s32 1, %s693_s14 }
   0x7   : > { %p31_p0 = scmp.ge.s32.totalorder %s29_s20, 2  ;;  %p116_p1 = scmp.ne.s32.totalorder %s693_s14, %s689_s13 }
   0x8   : > { %p117_p2 = scmp.eq.s32.totalorder %s439_s18, 1  ;;  %p122_p3 = scmp.ne.s32.totalorder %s689_s13, %s685_s12 }
   0x9   : > { %s954_s20 = smov (%p31_p0, %s29_s20), 0  ;;  %p123_p5 = scmp.eq.s32.totalorder %s440_s19, 1 }
   0xa   : > { %p775_p4 = por %p117_p2, %p116_p1  ;;  %s101_s23 = ssub.s32 %s701_s16, %s954_s20 }
   0xb   : > { %p441_p6 = scmp.ge.s32.totalorder %s705_s17, 1  ;;  %p104_p7 = scmp.eq.s32.totalorder %s101_s23, 0 }
   0xc   : > { %s939_s22 = scalar_select %p775_p4, 1, 0 }
   0xd   : > { %p782_p8 = por %p123_p5, %p122_p3  ;;  %p130_p9 = scmp.lt.s32.totalorder %s705_s17, 3 }
   0xe   : > { %s788_s25 = scalar_select %p104_p7, %s693_s14, %s106_s21  }
   0xf   : > { %s940_s24 = scalar_select %p782_p8, 1, 0 }
  0x10   : > { %p790_p10 = pnand %p441_p6, %p130_p9  ;;  %p794_p11 = scmp.eq.s32.totalorder %s439_s18, 0 }
  0x11   : > { %s707_s28 = smov [#allocation2]   ;;  %s595_s6 = scalar_lea.hbm %s932_s1, 3072 }
  0x12   : > { %s941_s26 = scalar_select %p790_p10, 1, 0 }
  0x13   : > { %s942_s27 = scalar_select %p794_p11, 1, 0 }
  0x14   : > { %p524_p12 = pneg %p790_p10  ;;  %s142_s29 = sshll.u32 %s707_s28, 4  ;;  %s143_s29 = int_to_ptr.vmem [resolvable:$true] %s142_s29 }
  0x15   : > { %p596_p0 = scmp.ne.s32.totalorder %s932_s1, %s595_s6  ;;  %p602_p5 = scmp.lt.u32.totalorder %s595_s6, %s932_s1 }
  0x16   : > { %p802_p13 = pnand %p794_p11, %p524_p12 }
  0x18   : > { %p597_p1 = pneg %p802_p13 }
  0x1a   : > { %p598_p2 = pnand %p597_p1, %p596_p0 }
  0x1c   : > { %p599_p3 = pneg %p598_p2 }
  0x1e   : > { %p604_p6 = pnand %p602_p5, %p599_p3 }
  0x20   : > { %607 = shalt.err (!%p604_p6)
}
  0x21   : > { %s608_s11 = scalar_lea.vmem %s143_s29, 3072  ;;  %p616_p8 = scmp.lt.s32.totalorder %s143_s29, %s143_s29 }
  0x22   : > { %p609_p7 = scmp.ne.s32.totalorder %s143_s29, %s608_s11  ;;  %p617_p4 = scmp.lt.s32.totalorder %s608_s11, %s608_s11 }
  0x24   : > { %p611_p9 = pnand %p609_p7, %p597_p1  ;;  %p618_p11 = por %p617_p4, %p616_p8 }
  0x26   : > { %p612_p12 = pneg %p611_p9 }
  0x28   : > { %p619_p10 = pnand %p618_p11, %p612_p12 }
  0x2a   : > { %622 = shalt.err (!%p619_p10)
}
  0x2b   : > { %s708_s18 = smov 128   ;;  %s709_s19 = smov 8  }
  0x2c   : > { %527 = dma.hbm_to_vmem [thread:$0]  (!%p802_p13), %s932_s1, 3072, %s143_s29, [#allocation3], %s708_s18, %s708_s18, %s709_s19  }
  0x2d   : > { %p944_p0 = scmp.ne.s32.totalorder %s941_s26, 0 }
  0x2e   : > { %p945_p2 = scmp.ne.s32.totalorder (!%p944_p0), %s942_s27, 0 }
  0x2f   : > { %169 = sbr.rel (%p944_p0) target bundleno = 415 (0x19f), region = 32 }
  0x36   : > { %676 = dma.done.wait (%p945_p2), [#allocation3], 3072  }
  0x37   : > { %678 = vsyncadd (%p945_p2), [#allocation3], 4294964224  ;;  %p193_p4 = scmp.lt.s32.totalorder %s697_s15, 1  ;;  %v710_v0 = vmov 0.0|0.0   ;;  %vm205_vm0 = vcmask 1046528   ;;  %vm217_vm1 = vcmask 1045504  }
  0x38   : > { %457 = vmatprep.subr.bf16.mxu0 %v710_v0  ;;  %493 = vmatprep.subr.bf16.mxu1 %v710_v0  ;;  %v226_v7 = vld [vmem:[#allocation2] sm:$0xff]  ;;  %v227_v8 = vld [vmem:[#allocation2 + $0x8] sm:$0xff]  ;;  %v228_v9 = vld [vmem:[#allocation2 + $0x10] sm:$0xff]  ;;  %vm223_vm2 = vcmask 523264   ;;  %s711_s27 = smov 64   ;;  %s190_s5 = sand.u32 1, %s689_s13  }
  0x39   : > { %s194_s28 = scalar_select %p193_p4, %s697_s15, 1  ;;  %v458_v10 = vpack.c.bf16 %v227_v8, %v226_v7  ;;  %v229_v11 = vld [vmem:[#allocation2 + $0x18] sm:$0xff]  ;;  %v230_v20 = vld [vmem:[#allocation2 + $0x20] sm:$0xff]  ;;  %v231_v21 = vld [vmem:[#allocation2 + $0x28] sm:$0xff] }
  0x3a   : > { %v461_v18 = vpack.c.bf16 %v229_v11, %v228_v9  ;;  %v464_v23 = vpack.c.bf16 %v231_v21, %v230_v20  ;;  %v232_v24 = vld [vmem:[#allocation2 + $0x30] sm:$0xff]  ;;  %v233_v25 = vld [vmem:[#allocation2 + $0x38] sm:$0xff]  ;;  %v234_v27 = vld [vmem:[#allocation2 + $0x40] sm:$0xff]  ;;  %s446_s6 = sshll.u32 %s190_s5, 4  ;;  %s456_s9 = sshll.u32 %s697_s15, 8 }
  0x3b   : > { %s517_s30 = smul.u32 24, %s194_s28  ;;  %459 = vmatpush1.bf16.msra.mxu0 %v458_v10  ;;  %505 = vmatpush1.bf16.msra.mxu1 %v458_v10  ;;  %v467_v26 = vpack.c.bf16 %v233_v25, %v232_v24  ;;  %v235_v28 = vld [vmem:[#allocation2 + $0x48] sm:$0xff]  ;;  %v236_v30 = vld [vmem:[#allocation2 + $0x50] sm:$0xff]  ;;  %v237_v31 = vld [vmem:[#allocation2 + $0x58] sm:$0xff]  ;;  %s192_s7 = scalar_lea.vmem [#allocation5], %s446_s6 }
  0x3c   : > { %460 = vmatprep.subr.bf16.mxu0 %v710_v0  ;;  %494 = vmatprep.subr.bf16.mxu1 %v710_v0  ;;  %v470_v29 = vpack.c.bf16 %v235_v28, %v234_v27  ;;  %v473_v32 = vpack.c.bf16 %v237_v31, %v236_v30  ;;  %v238_v33 = vld [vmem:[#allocation2 + $0x60] sm:$0xff]  ;;  %v239_v34 = vld [vmem:[#allocation2 + $0x68] sm:$0xff]  ;;  %v240_v36 = vld [vmem:[#allocation2 + $0x70] sm:$0xff]  ;;  %s354_s8 = sshll.u32 %s192_s7, 4  ;;  %s883_s21 = scalar_lea.hbm %s934_s3, %s456_s9  ;;  %s878_s8 = int_to_ptr.vmem [resolvable:$true] %s354_s8 }
  0x3d   : > { %s197_s26 = scalar_lea.vmem %s931_s0, %s517_s30  ;;  %v476_v35 = vpack.c.bf16 %v239_v34, %v238_v33  ;;  %v241_v37 = vld [vmem:[#allocation2 + $0x78] sm:$0xff]  ;;  %v242_v39 = vld [vmem:[#allocation2 + $0x80] sm:$0xff]  ;;  %v243_v40 = vld [vmem:[#allocation2 + $0x88] sm:$0xff]  ;;  %s885_s15 = scalar_lea.sflag [#allocation4], %s190_s5 }
  0x3e   : > { %v835_v1 = vld [vmem:[%s197_s26] sm:$0xff]  ;;  %v837_v2 = vld [vmem:[%s197_s26 + $0x8] sm:$0xff]  ;;  %v201_v3 = vld [vmem:[%s197_s26 + $0x10] sm:$0x3]  ;;  %v479_v38 = vpack.c.bf16 %v241_v37, %v240_v36  ;;  %v482_v41 = vpack.c.bf16 %v243_v40, %v242_v39  ;;  %s623_s23 = scalar_lea.vmem %s878_s8, 256  ;;  %p946_p10 = scmp.ne.s32.totalorder %s939_s22, 0 }
  0x3f   : > { %v206_v4 = vrot.slane %v835_v1, 1  ;;  %v207_v5 = vrot.slane %v837_v2, 1  ;;  %v209_v6 = vrot.slane %v201_v3, 1  ;;  %v218_v12 = vrot.slane %v835_v1, 2  ;;  %462 = vmatpush1.bf16.msra.mxu0 %v461_v18  ;;  %506 = vmatpush1.bf16.msra.mxu1 %v461_v18  ;;  %v244_v42 = vld [vmem:[#allocation2 + $0x90] sm:$0xff]  ;;  %v245_v43 = vld [vmem:[#allocation2 + $0x98] sm:$0xff]  ;;  %p624_p8 = scmp.ne.s32.totalorder %s878_s8, %s623_s23 }
  0x40   : > { %v219_v13 = vrot.slane %v837_v2, 2  ;;  %v221_v14 = vrot.slane %v201_v3, 2  ;;  %463 = vmatprep.subr.bf16.mxu0 %v710_v0  ;;  %495 = vmatprep.subr.bf16.mxu1 %v710_v0  ;;  %v485_v44 = vpack.c.bf16 %v245_v43, %v244_v42  ;;  %v246_v45 = vld [vmem:[#allocation2 + $0xa0] sm:$0xff]  ;;  %v247_v46 = vld [vmem:[#allocation2 + $0xa8] sm:$0xff]  ;;  %v248_v48 = vld [vmem:[#allocation2 + $0xb0] sm:$0xff]  ;;  %s712_s28 = smov [#allocation5]  }
  0x41   : > { %v208_v15 = vsel %vm205_vm0, %v206_v4, %v207_v5  ;;  %v210_v16 = vsel %vm205_vm0, %v207_v5, %v209_v6  ;;  %v488_v47 = vpack.c.bf16 %v247_v46, %v246_v45  ;;  %v249_v49 = vld [vmem:[#allocation2 + $0xb8] sm:$0xff]  ;;  %v448_v56 = vld [vmem:[%s933_s2] ss:$0 sm:$0xff]  ;;  %p625_p11 = pnand %p624_p8, %p946_p10  ;;  %s627_s30 = sshll.u32 %s712_s28, 4  ;;  %s628_s30 = int_to_ptr.vmem [resolvable:$false] %s627_s30 }
  0x42   : > { %v590_v17 = vpack.i.bf16 %v210_v16, %v208_v15  ;;  %v220_v19 = vsel %vm217_vm1, %v218_v12, %v219_v13  ;;  %v222_v22 = vsel %vm217_vm1, %v219_v13, %v221_v14  ;;  %v491_v50 = vpack.c.bf16 %v249_v49, %v248_v48  ;;  %s629_s29 = scalar_lea.vmem %s628_s30, 512  ;;  %p630_p1 = scmp.lt.s32.totalorder %s878_s8, %s628_s30 }
  0x43   : > { %449 = vmatprep.mubr.msk.f32.mxu0 %vm223_vm2, %v220_v19  ;;  %450 = vmatprep.mubr.msk.f32.mxu1 %vm223_vm2, %v222_v22  ;;  %p626_p13 = pneg %p625_p11  ;;  %p631_p3 = scmp.lt.s32.totalorder %s629_s29, %s623_s23 }
  0x44   : > { %591 = vrot.lane.b32.xlu0 %v590_v17, %s711_s27  ;;  %465 = vmatpush1.bf16.msra.mxu0 %v464_v23 }
  0x45   : > { %507 = vmatpush1.bf16.msra.mxu1 %v464_v23  ;;  %466 = vmatprep.subr.bf16.mxu0 %v710_v0  ;;  %p632_p5 = por %p631_p3, %p630_p1 }
  0x46   : > { %496 = vmatprep.subr.bf16.mxu1 %v710_v0 }
  0x47   : > { %p633_p6 = pnand %p632_p5, %p626_p13 }
  0x48   : > { %468 = vmatpush1.bf16.msra.mxu0 %v467_v26 }
  0x49   : > { %508 = vmatpush1.bf16.msra.mxu1 %v467_v26  ;;  %469 = vmatprep.subr.bf16.mxu0 %v710_v0 }
  0x4a   : > { %497 = vmatprep.subr.bf16.mxu1 %v710_v0 }
  0x4c   : > { %471 = vmatpush1.bf16.msra.mxu0 %v470_v29 }
  0x4d   : > { %509 = vmatpush1.bf16.msra.mxu1 %v470_v29  ;;  %472 = vmatprep.subr.bf16.mxu0 %v710_v0 }
  0x4e   : > { %498 = vmatprep.subr.bf16.mxu1 %v710_v0 }
  0x50   : > { %474 = vmatpush1.bf16.msra.mxu0 %v473_v32 }
  0x51   : > { %510 = vmatpush1.bf16.msra.mxu1 %v473_v32  ;;  %475 = vmatprep.subr.bf16.mxu0 %v710_v0 }
  0x52   : > { %499 = vmatprep.subr.bf16.mxu1 %v710_v0 }
  0x54   : > { %477 = vmatpush1.bf16.msra.mxu0 %v476_v35 }
  0x55   : > { %511 = vmatpush1.bf16.msra.mxu1 %v476_v35  ;;  %478 = vmatprep.subr.bf16.mxu0 %v710_v0 }
  0x56   : > { %500 = vmatprep.subr.bf16.mxu1 %v710_v0 }
  0x58   : > { %480 = vmatpush1.bf16.msra.mxu0 %v479_v38 }
  0x59   : > { %512 = vmatpush1.bf16.msra.mxu1 %v479_v38  ;;  %481 = vmatprep.subr.bf16.mxu0 %v710_v0 }
  0x5a   : > { %501 = vmatprep.subr.bf16.mxu1 %v710_v0 }
  0x5c   : > { %483 = vmatpush1.bf16.msra.mxu0 %v482_v41 }
  0x5d   : > { %513 = vmatpush1.bf16.msra.mxu1 %v482_v41  ;;  %484 = vmatprep.subr.bf16.mxu0 %v710_v0 }
  0x5e   : > { %502 = vmatprep.subr.bf16.mxu1 %v710_v0 }
  0x60   : > { %486 = vmatpush1.bf16.msra.mxu0 %v485_v44 }
  0x61   : > { %514 = vmatpush1.bf16.msra.mxu1 %v485_v44  ;;  %487 = vmatprep.subr.bf16.mxu0 %v710_v0 }
  0x62   : > { %503 = vmatprep.subr.bf16.mxu1 %v710_v0 }
  0x64   : > { %489 = vmatpush1.bf16.msra.mxu0 %v488_v47 }
  0x65   : > { %515 = vmatpush1.bf16.msra.mxu1 %v488_v47  ;;  %490 = vmatprep.subr.bf16.mxu0 %v710_v0 }
  0x66   : > { %504 = vmatprep.subr.bf16.mxu1 %v710_v0 }
  0x68   : > { %492 = vmatpush1.bf16.msra.mxu0 %v491_v50 }
  0x69   : > { %516 = vmatpush1.bf16.msra.mxu1 %v491_v50 }
  0xb6   : > { %v592_v51 = vpop.permute.xlu0 %591 }
  0xb7   : > { %v594_v52 = vunpack.i.h.bf16 %v592_v51  ;;  %v593_v53 = vunpack.i.l.bf16 %v592_v51 }
  0xb9   : > { %v224_v54 = vsel %vm223_vm2, %v835_v1, %v593_v53  ;;  %v225_v55 = vsel %vm223_vm2, %v837_v2, %v594_v52 }
  0xba   : > { %326 = vmatmul.mubr.f32.vlgmr.msra.gmra.mrb[0].mxu0 %v224_v54  ;;  %331 = vmatmul.mubr.f32.vlgmr.msra.gmra.mrb[0].mxu1 %v225_v55 }
 0x18d   : > { %v327_v57 = vpop.f32.mrb[0].mxu0  ;;  %v332_v58 = vpop.f32.mrb[0].mxu1 }
 0x18e   : > { %v328_v59 = vadd.f32 %v448_v56, %v327_v57  ;;  %v333_v60 = vadd.f32 %v448_v56, %v332_v58  ;;  %v329_v61 = vpop.f32.mrb[1].mxu0  ;;  %v334_v62 = vpop.f32.mrb[1].mxu1 }
 0x190   : > { %336 = vst [vmem:[%s192_s7] sm:$0xff] %v328_v59  ;;  %337 = vst [vmem:[%s192_s7 + $0x8] sm:$0xff] %v333_v60 }
 0x191   : > { %636 = shalt.err (!%p633_p6)
}
 0x192   : > { %s637_s4 = scalar_lea.hbm %s883_s21, 256  ;;  %s641_s5 = scalar_lea.hbm %s934_s3, 512 }
 0x193   : > { %p638_p7 = scmp.ne.s32.totalorder %s883_s21, %s637_s4  ;;  %p642_p0 = scmp.lt.u32.totalorder %s883_s21, %s934_s3 }
 0x194   : > { %p643_p2 = scmp.lt.u32.totalorder %s641_s5, %s637_s4  ;;  %p645_p8 = scmp.lt.u32.totalorder %s637_s4, %s883_s21 }
 0x195   : > { %p639_p9 = pnand %p638_p7, %p946_p10 }
 0x196   : > { %p644_p4 = por %p643_p2, %p642_p0 }
 0x197   : > { %p640_p12 = pneg %p639_p9 }
 0x198   : > { %p646_p11 = por %p645_p8, %p644_p4 }
 0x19a   : > { %p647_p13 = pnand %p646_p11, %p640_p12 }
 0x19c   : > { %650 = shalt.err (!%p647_p13)
}
 0x19d   : > { %s713_s9 = smov 128   ;;  %s714_s10 = smov 8  }
 0x19e   : > { %522 = dma.vmem_to_hbm [thread:$0]  (%p946_p10), %s878_s8, 256, %s883_s21, %s885_s15, %s713_s9, %s713_s9, %s714_s10  }
 0x19f PF: > { %p534_p1 = scmp.ge.s32.totalorder %s705_s17, 2  ;;  %s369_s11 = sand.u32 1, %s685_s12  }
 0x1a0   : > { %p947_p3 = scmp.ne.s32.totalorder %s940_s24, 0  ;;  %s370_s18 = scalar_lea.sflag [#allocation4], %s369_s11 }
 0x1a2   : > { %p529_p5 = pnand %p534_p1, %p947_p3 }
 0x1a4   : > { %680 = dma.done.wait (!%p529_p5), %s370_s18, 256  }
 0x1a5   : > { %682 = vsyncadd (!%p529_p5), %s370_s18, 4294967040  ;;  %s17_s17 = sadd.s32 1, %s705_s17   ;;  %s948_s12 = smov %s689_s13 }
 0x1a6   : > { %p14_p6 = scmp.ge.s32.totalorder %s17_s17, 4   ;;  %s949_s13 = smov %s693_s14 }
 0x1a7   : > { %s950_s14 = smov %s788_s25  ;;  %s951_s15 = smov %s701_s16 }
 0x1a8   : > { %s952_s16 = smov %s954_s20  ;;  %16 = sbr.rel (!%p14_p6) target bundleno = 5 (0x5), region = 72 }
 0x1af   :  { %375 = vsyncpa [#allocation3], 1 }
 0x1b0   :  { %377 = vsyncpa [#allocation3 + $0x1], 1 }
 0x1b1   :  { %378 = vsyncpa [#allocation4], 1 }
 0x1b2   :  { %380 = vsyncpa [#allocation4 + $0x1], 1 }

</bundles_post_ra>
